<compile_context>
chip_gen: v7x
topology: tpu7x:2x2x1
jax: 0.10.0
libtpu: 0.0.40
codegen_flags: <defaults>
</compile_context>

<pallas_src>
import math
import functools

import jax
import jax.numpy as jnp
from jax.experimental import pallas as pl
from jax.experimental.pallas import tpu as pltpu


def _relpos_kernel(idx_ref, tab_ref, k_ref, v_ref, *, d_model, heads_per_feature):
    # idx_ref: (F, 1, ts1, S) int32      -- indices for all features, one batch b
    # tab_ref: (F, vocab, 2*d_model) f32 -- pre-scaled tables (row 0 is zero)
    # k_ref/v_ref: (1, num_heads, ts1, S*d_model) f32  -- lane-dense output tiles
    F = idx_ref.shape[0]
    ts1 = idx_ref.shape[2]
    S = idx_ref.shape[3]
    vocab = tab_ref.shape[1]

    for f in range(F):
        idx_f = idx_ref[f, 0]                     # (ts1, S) int32
        tab_f = tab_ref[f]                        # (vocab, 2*d_model) f32
        k_parts = []
        v_parts = []
        for s2 in range(S):
            col = idx_f[:, s2:s2 + 1]             # (ts1, 1)
            # Embedding gather as one-hot matmul; padding_idx=0 is handled by
            # the zeroed row 0 of the table.  Compute is hidden under stores.
            onehot = (col == jax.lax.broadcasted_iota(
                jnp.int32, (ts1, vocab), 1)).astype(jnp.float32)
            emb = jnp.dot(onehot, tab_f, preferred_element_type=jnp.float32)
            k_parts.append(emb[:, :d_model])      # k half
            v_parts.append(emb[:, d_model:])      # v half
        k_tile = jnp.concatenate(k_parts, axis=1)  # (ts1, S*d_model), lane-dense
        v_tile = jnp.concatenate(v_parts, axis=1)

        # Replicate across the heads of this feature directly in the kernel:
        # recompute/copy in VMEM is free, the saved XLA broadcast+transpose
        # pass over the r-times larger tensor is not.
        for j in range(heads_per_feature):
            h = f * heads_per_feature + j
            k_ref[0, h] = k_tile
            v_ref[0, h] = v_tile


def relative_position_embedding_fwd(inputs, tables, d_model, num_heads, *,
                                    tile_s1=None):
    """inputs: list (len = num_features) of int32 [B, S, S] index arrays.
    tables: [num_features, 2k+2, 2*d_model] float32 (row 0 == 0, padding_idx).
    Returns (k_emb, v_emb), each [B, num_heads, S, S, d_model] float32."""
    F = len(inputs)
    B, S, S2 = inputs[0].shape
    assert S == S2
    assert num_heads % F == 0
    r = num_heads // F
    vocab, two_d = tables.shape[1], tables.shape[2]
    assert tables.shape[0] == F and two_d == 2 * d_model
    assert (S * d_model) % 128 == 0, "lane-dense output needs S*d_model % 128 == 0"

    if tile_s1 is None:
        tile_s1 = S                                # biggest tile that fits
    assert S % tile_s1 == 0
    assert tile_s1 == S or tile_s1 % 8 == 0

    idx = jnp.stack([x.astype(jnp.int32) for x in inputs], axis=0)  # (F,B,S,S)
    # Fold the sqrt(d_model) scale into the (tiny) table once.
    tab = (tables * math.sqrt(d_model)).astype(jnp.float32)

    grid = (B, S // tile_s1)
    out_sds = jax.ShapeDtypeStruct((B, num_heads, S, S * d_model), jnp.float32)

    n_out_bytes = 2 * B * num_heads * S * S * d_model * 4
    cost = pl.CostEstimate(
        flops=2 * F * B * S * S * vocab * two_d,
        transcendentals=0,
        bytes_accessed=idx.size * 4 + tab.size * 4 + n_out_bytes)

    k_flat, v_flat = pl.pallas_call(
        functools.partial(_relpos_kernel, d_model=d_model, heads_per_feature=r),
        out_shape=(out_sds, out_sds),
        grid_spec=pltpu.PrefetchScalarGridSpec(
            num_scalar_prefetch=0,
            grid=grid,
            in_specs=[
                # indices: all features, one (b, s1-tile); S stays on lanes.
                pl.BlockSpec((F, 1, tile_s1, S), lambda b, t: (0, b, t, 0)),
                # full table stack resident in VMEM (constant block index).
                pl.BlockSpec((F, vocab, two_d), lambda b, t: (0, 0, 0)),
            ],
            out_specs=(
                pl.BlockSpec((1, num_heads, tile_s1, S * d_model),
                             lambda b, t: (b, 0, t, 0)),
                pl.BlockSpec((1, num_heads, tile_s1, S * d_model),
                             lambda b, t: (b, 0, t, 0)),
            ),
        ),
        compiler_params=pltpu.CompilerParams(
            dimension_semantics=("parallel", "parallel")),
        cost_estimate=cost,
    )(idx, tab)

    # Trailing-dim split only: free metadata reshape, no extra HBM pass.
    k_emb = k_flat.reshape(B, num_heads, S, S, d_model)
    v_emb = v_flat.reshape(B, num_heads, S, S, d_model)
    return k_emb, v_emb


if __name__ == "__main__":
    # module hyperparameters
    d_model, k, num_heads, num_features = 32, 4, 4, 2
    B, S = 2, 8
    vocab = 2 * k + 2

    key = jax.random.PRNGKey(0)
    key_tab, key_idx = jax.random.split(key)

    # deterministic init: nn.Embedding(2k+2, 2*d_model, padding_idx=0) per feature
    tables = jax.random.normal(key_tab, (num_features, vocab, 2 * d_model), jnp.float32)
    tables = tables.at[:, 0, :].set(0.0)   # padding_idx = 0

    idx_keys = jax.random.split(key_idx, num_features)
    inputs = [jax.random.randint(ik, (B, S, S), 0, vocab, jnp.int32) for ik in idx_keys]

    k_emb, v_emb = relative_position_embedding_fwd(inputs, tables, d_model, num_heads)
    jax.block_until_ready((k_emb, v_emb))

    # pure-JAX reference of the PyTorch forward
    def reference():
        r = num_heads // num_features
        scale = math.sqrt(d_model)
        ks, vs = [], []
        for i in range(num_features):
            pe = tables[i][inputs[i]] * scale                 # (B,S,S,2d)
            pe = pe.reshape(B, S, S, 2, d_model)
            ke, ve = pe[..., 0, :], pe[..., 1, :]

            def rep(e):
                e = jnp.tile(e, (1, 1, 1, r)).reshape(B, S, S, r, d_model)
                return jnp.transpose(e, (0, 3, 1, 2, 4))

            ks.append(rep(ke))
            vs.append(rep(ve))
        return jnp.concatenate(ks, axis=1), jnp.concatenate(vs, axis=1)

    k_ref, v_ref = reference()
    assert k_emb.shape == (B, num_heads, S, S, d_model)
    assert v_emb.shape == (B, num_heads, S, S, d_model)
    assert jnp.allclose(k_emb, k_ref, atol=1e-5, rtol=1e-5)
    assert jnp.allclose(v_emb, v_ref, atol=1e-5, rtol=1e-5)
    print("KERNEL_OK")
</pallas_src>

<mosaic_0001>
module attributes {stable_mosaic.version = 11 : i64} {
  func.func @_relpos_kernel(%arg0: i32, %arg1: i32, %arg2: memref<2x1x8x8xi32, #tpu.memory_space<vmem>>, %arg3: memref<2x10x64xf32, #tpu.memory_space<vmem>>, %arg4: memref<1x4x8x256xf32, #tpu.memory_space<vmem>>, %arg5: memref<1x4x8x256xf32, #tpu.memory_space<vmem>>) attributes {dimension_semantics = [#tpu.dimension_semantics<parallel>, #tpu.dimension_semantics<parallel>], iteration_bounds = array<i64: 2, 1>, scalar_prefetch = 0 : i64, scratch_operands = 0 : i64, tpu.core_type = #tpu.core_type<tc>, window_params = [{transform_indices = @transform_0, window_bounds = array<i64: 2, 1, 8, 8>}, {pipeline_mode = #tpu.pipeline_mode<synchronous>, transform_indices = @transform_1, window_bounds = array<i64: 2, 10, 64>}, {transform_indices = @transform_2, window_bounds = array<i64: 1, 4, 8, 256>}, {transform_indices = @transform_3, window_bounds = array<i64: 1, 4, 8, 256>}]} {
    %c0 = arith.constant 0 : index
    %c0_0 = arith.constant 0 : index
    %c0_1 = arith.constant 0 : index
    %c0_2 = arith.constant 0 : index
    %0 = vector.load %arg2[%c0, %c0_0, %c0_1, %c0_2] : memref<2x1x8x8xi32, #tpu.memory_space<vmem>>, vector<1x1x8x8xi32>
    %1 = vector.shape_cast %0 : vector<1x1x8x8xi32> to vector<8x8xi32>
    %c0_3 = arith.constant 0 : index
    %c0_4 = arith.constant 0 : index
    %c0_5 = arith.constant 0 : index
    %2 = vector.load %arg3[%c0_3, %c0_4, %c0_5] : memref<2x10x64xf32, #tpu.memory_space<vmem>>, vector<1x10x64xf32>
    %3 = vector.shape_cast %2 : vector<1x10x64xf32> to vector<10x64xf32>
    %4 = vector.extract_strided_slice %1 {offsets = [0, 0], sizes = [8, 1], strides = [1, 1]} : vector<8x8xi32> to vector<8x1xi32>
    %5 = tpu.iota {dimensions = array<i32: 1>} : vector<8x10xi32>
    %6 = vector.broadcast %4 : vector<8x1xi32> to vector<8x10xi32>
    %7 = arith.cmpi eq, %6, %5 : vector<8x10xi32>
    %8 = arith.extui %7 : vector<8x10xi1> to vector<8x10xi32>
    %9 = arith.sitofp %8 : vector<8x10xi32> to vector<8x10xf32>
    %cst = arith.constant dense<0.000000e+00> : vector<8x64xf32>
    %10 = tpu.matmul %9, %3, %cst {dimension_numbers = #tpu.dot_dimension_numbers<[1], [0], [0], [1], [0, 0, 1, 1], [], []>} : vector<8x10xf32>, vector<10x64xf32>, vector<8x64xf32> -> vector<8x64xf32>
    %11 = vector.extract_strided_slice %10 {offsets = [0, 0], sizes = [8, 32], strides = [1, 1]} : vector<8x64xf32> to vector<8x32xf32>
    %12 = vector.extract_strided_slice %10 {offsets = [0, 32], sizes = [8, 32], strides = [1, 1]} : vector<8x64xf32> to vector<8x32xf32>
    %13 = vector.extract_strided_slice %1 {offsets = [0, 1], sizes = [8, 1], strides = [1, 1]} : vector<8x8xi32> to vector<8x1xi32>
    %14 = tpu.iota {dimensions = array<i32: 1>} : vector<8x10xi32>
    %15 = vector.broadcast %13 : vector<8x1xi32> to vector<8x10xi32>
    %16 = arith.cmpi eq, %15, %14 : vector<8x10xi32>
    %17 = arith.extui %16 : vector<8x10xi1> to vector<8x10xi32>
    %18 = arith.sitofp %17 : vector<8x10xi32> to vector<8x10xf32>
    %cst_6 = arith.constant dense<0.000000e+00> : vector<8x64xf32>
    %19 = tpu.matmul %18, %3, %cst_6 {dimension_numbers = #tpu.dot_dimension_numbers<[1], [0], [0], [1], [0, 0, 1, 1], [], []>} : vector<8x10xf32>, vector<10x64xf32>, vector<8x64xf32> -> vector<8x64xf32>
    %20 = vector.extract_strided_slice %19 {offsets = [0, 0], sizes = [8, 32], strides = [1, 1]} : vector<8x64xf32> to vector<8x32xf32>
    %21 = vector.extract_strided_slice %19 {offsets = [0, 32], sizes = [8, 32], strides = [1, 1]} : vector<8x64xf32> to vector<8x32xf32>
    %22 = vector.extract_strided_slice %1 {offsets = [0, 2], sizes = [8, 1], strides = [1, 1]} : vector<8x8xi32> to vector<8x1xi32>
    %23 = tpu.iota {dimensions = array<i32: 1>} : vector<8x10xi32>
    %24 = vector.broadcast %22 : vector<8x1xi32> to vector<8x10xi32>
    %25 = arith.cmpi eq, %24, %23 : vector<8x10xi32>
    %26 = arith.extui %25 : vector<8x10xi1> to vector<8x10xi32>
    %27 = arith.sitofp %26 : vector<8x10xi32> to vector<8x10xf32>
    %cst_7 = arith.constant dense<0.000000e+00> : vector<8x64xf32>
    %28 = tpu.matmul %27, %3, %cst_7 {dimension_numbers = #tpu.dot_dimension_numbers<[1], [0], [0], [1], [0, 0, 1, 1], [], []>} : vector<8x10xf32>, vector<10x64xf32>, vector<8x64xf32> -> vector<8x64xf32>
    %29 = vector.extract_strided_slice %28 {offsets = [0, 0], sizes = [8, 32], strides = [1, 1]} : vector<8x64xf32> to vector<8x32xf32>
    %30 = vector.extract_strided_slice %28 {offsets = [0, 32], sizes = [8, 32], strides = [1, 1]} : vector<8x64xf32> to vector<8x32xf32>
    %31 = vector.extract_strided_slice %1 {offsets = [0, 3], sizes = [8, 1], strides = [1, 1]} : vector<8x8xi32> to vector<8x1xi32>
    %32 = tpu.iota {dimensions = array<i32: 1>} : vector<8x10xi32>
    %33 = vector.broadcast %31 : vector<8x1xi32> to vector<8x10xi32>
    %34 = arith.cmpi eq, %33, %32 : vector<8x10xi32>
    %35 = arith.extui %34 : vector<8x10xi1> to vector<8x10xi32>
    %36 = arith.sitofp %35 : vector<8x10xi32> to vector<8x10xf32>
    %cst_8 = arith.constant dense<0.000000e+00> : vector<8x64xf32>
    %37 = tpu.matmul %36, %3, %cst_8 {dimension_numbers = #tpu.dot_dimension_numbers<[1], [0], [0], [1], [0, 0, 1, 1], [], []>} : vector<8x10xf32>, vector<10x64xf32>, vector<8x64xf32> -> vector<8x64xf32>
    %38 = vector.extract_strided_slice %37 {offsets = [0, 0], sizes = [8, 32], strides = [1, 1]} : vector<8x64xf32> to vector<8x32xf32>
    %39 = vector.extract_strided_slice %37 {offsets = [0, 32], sizes = [8, 32], strides = [1, 1]} : vector<8x64xf32> to vector<8x32xf32>
    %40 = vector.extract_strided_slice %1 {offsets = [0, 4], sizes = [8, 1], strides = [1, 1]} : vector<8x8xi32> to vector<8x1xi32>
    %41 = tpu.iota {dimensions = array<i32: 1>} : vector<8x10xi32>
    %42 = vector.broadcast %40 : vector<8x1xi32> to vector<8x10xi32>
    %43 = arith.cmpi eq, %42, %41 : vector<8x10xi32>
    %44 = arith.extui %43 : vector<8x10xi1> to vector<8x10xi32>
    %45 = arith.sitofp %44 : vector<8x10xi32> to vector<8x10xf32>
    %cst_9 = arith.constant dense<0.000000e+00> : vector<8x64xf32>
    %46 = tpu.matmul %45, %3, %cst_9 {dimension_numbers = #tpu.dot_dimension_numbers<[1], [0], [0], [1], [0, 0, 1, 1], [], []>} : vector<8x10xf32>, vector<10x64xf32>, vector<8x64xf32> -> vector<8x64xf32>
    %47 = vector.extract_strided_slice %46 {offsets = [0, 0], sizes = [8, 32], strides = [1, 1]} : vector<8x64xf32> to vector<8x32xf32>
    %48 = vector.extract_strided_slice %46 {offsets = [0, 32], sizes = [8, 32], strides = [1, 1]} : vector<8x64xf32> to vector<8x32xf32>
    %49 = vector.extract_strided_slice %1 {offsets = [0, 5], sizes = [8, 1], strides = [1, 1]} : vector<8x8xi32> to vector<8x1xi32>
    %50 = tpu.iota {dimensions = array<i32: 1>} : vector<8x10xi32>
    %51 = vector.broadcast %49 : vector<8x1xi32> to vector<8x10xi32>
    %52 = arith.cmpi eq, %51, %50 : vector<8x10xi32>
    %53 = arith.extui %52 : vector<8x10xi1> to vector<8x10xi32>
    %54 = arith.sitofp %53 : vector<8x10xi32> to vector<8x10xf32>
    %cst_10 = arith.constant dense<0.000000e+00> : vector<8x64xf32>
    %55 = tpu.matmul %54, %3, %cst_10 {dimension_numbers = #tpu.dot_dimension_numbers<[1], [0], [0], [1], [0, 0, 1, 1], [], []>} : vector<8x10xf32>, vector<10x64xf32>, vector<8x64xf32> -> vector<8x64xf32>
    %56 = vector.extract_strided_slice %55 {offsets = [0, 0], sizes = [8, 32], strides = [1, 1]} : vector<8x64xf32> to vector<8x32xf32>
    %57 = vector.extract_strided_slice %55 {offsets = [0, 32], sizes = [8, 32], strides = [1, 1]} : vector<8x64xf32> to vector<8x32xf32>
    %58 = vector.extract_strided_slice %1 {offsets = [0, 6], sizes = [8, 1], strides = [1, 1]} : vector<8x8xi32> to vector<8x1xi32>
    %59 = tpu.iota {dimensions = array<i32: 1>} : vector<8x10xi32>
    %60 = vector.broadcast %58 : vector<8x1xi32> to vector<8x10xi32>
    %61 = arith.cmpi eq, %60, %59 : vector<8x10xi32>
    %62 = arith.extui %61 : vector<8x10xi1> to vector<8x10xi32>
    %63 = arith.sitofp %62 : vector<8x10xi32> to vector<8x10xf32>
    %cst_11 = arith.constant dense<0.000000e+00> : vector<8x64xf32>
    %64 = tpu.matmul %63, %3, %cst_11 {dimension_numbers = #tpu.dot_dimension_numbers<[1], [0], [0], [1], [0, 0, 1, 1], [], []>} : vector<8x10xf32>, vector<10x64xf32>, vector<8x64xf32> -> vector<8x64xf32>
    %65 = vector.extract_strided_slice %64 {offsets = [0, 0], sizes = [8, 32], strides = [1, 1]} : vector<8x64xf32> to vector<8x32xf32>
    %66 = vector.extract_strided_slice %64 {offsets = [0, 32], sizes = [8, 32], strides = [1, 1]} : vector<8x64xf32> to vector<8x32xf32>
    %67 = vector.extract_strided_slice %1 {offsets = [0, 7], sizes = [8, 1], strides = [1, 1]} : vector<8x8xi32> to vector<8x1xi32>
    %68 = tpu.iota {dimensions = array<i32: 1>} : vector<8x10xi32>
    %69 = vector.broadcast %67 : vector<8x1xi32> to vector<8x10xi32>
    %70 = arith.cmpi eq, %69, %68 : vector<8x10xi32>
    %71 = arith.extui %70 : vector<8x10xi1> to vector<8x10xi32>
    %72 = arith.sitofp %71 : vector<8x10xi32> to vector<8x10xf32>
    %cst_12 = arith.constant dense<0.000000e+00> : vector<8x64xf32>
    %73 = tpu.matmul %72, %3, %cst_12 {dimension_numbers = #tpu.dot_dimension_numbers<[1], [0], [0], [1], [0, 0, 1, 1], [], []>} : vector<8x10xf32>, vector<10x64xf32>, vector<8x64xf32> -> vector<8x64xf32>
    %74 = vector.extract_strided_slice %73 {offsets = [0, 0], sizes = [8, 32], strides = [1, 1]} : vector<8x64xf32> to vector<8x32xf32>
    %75 = vector.extract_strided_slice %73 {offsets = [0, 32], sizes = [8, 32], strides = [1, 1]} : vector<8x64xf32> to vector<8x32xf32>
    %76 = tpu.concatenate %11, %20, %29, %38, %47, %56, %65, %74 in 1 : vector<8x32xf32>, vector<8x32xf32>, vector<8x32xf32>, vector<8x32xf32>, vector<8x32xf32>, vector<8x32xf32>, vector<8x32xf32>, vector<8x32xf32> -> vector<8x256xf32>
    %77 = tpu.concatenate %12, %21, %30, %39, %48, %57, %66, %75 in 1 : vector<8x32xf32>, vector<8x32xf32>, vector<8x32xf32>, vector<8x32xf32>, vector<8x32xf32>, vector<8x32xf32>, vector<8x32xf32>, vector<8x32xf32> -> vector<8x256xf32>
    %c0_13 = arith.constant 0 : index
    %c0_14 = arith.constant 0 : index
    %c0_15 = arith.constant 0 : index
    %c0_16 = arith.constant 0 : index
    %78 = vector.load %arg4[%c0_13, %c0_14, %c0_15, %c0_16] : memref<1x4x8x256xf32, #tpu.memory_space<vmem>>, vector<1x1x8x256xf32>
    %79 = vector.shape_cast %78 : vector<1x1x8x256xf32> to vector<8x256xf32>
    %80 = vector.shape_cast %76 : vector<8x256xf32> to vector<1x1x8x256xf32>
    tpu.vector_store %arg4[%c0_13, %c0_14, %c0_15, %c0_16], %80 {strides = array<i32>} : memref<1x4x8x256xf32, #tpu.memory_space<vmem>>, vector<1x1x8x256xf32>,
    %c0_17 = arith.constant 0 : index
    %c0_18 = arith.constant 0 : index
    %c0_19 = arith.constant 0 : index
    %c0_20 = arith.constant 0 : index
    %81 = vector.load %arg5[%c0_17, %c0_18, %c0_19, %c0_20] : memref<1x4x8x256xf32, #tpu.memory_space<vmem>>, vector<1x1x8x256xf32>
    %82 = vector.shape_cast %81 : vector<1x1x8x256xf32> to vector<8x256xf32>
    %83 = vector.shape_cast %77 : vector<8x256xf32> to vector<1x1x8x256xf32>
    tpu.vector_store %arg5[%c0_17, %c0_18, %c0_19, %c0_20], %83 {strides = array<i32>} : memref<1x4x8x256xf32, #tpu.memory_space<vmem>>, vector<1x1x8x256xf32>,
    %c0_21 = arith.constant 0 : index
    %c1 = arith.constant 1 : index
    %c0_22 = arith.constant 0 : index
    %c0_23 = arith.constant 0 : index
    %84 = vector.load %arg4[%c0_21, %c1, %c0_22, %c0_23] : memref<1x4x8x256xf32, #tpu.memory_space<vmem>>, vector<1x1x8x256xf32>
    %85 = vector.shape_cast %84 : vector<1x1x8x256xf32> to vector<8x256xf32>
    %86 = vector.shape_cast %76 : vector<8x256xf32> to vector<1x1x8x256xf32>
    tpu.vector_store %arg4[%c0_21, %c1, %c0_22, %c0_23], %86 {strides = array<i32>} : memref<1x4x8x256xf32, #tpu.memory_space<vmem>>, vector<1x1x8x256xf32>,
    %c0_24 = arith.constant 0 : index
    %c1_25 = arith.constant 1 : index
    %c0_26 = arith.constant 0 : index
    %c0_27 = arith.constant 0 : index
    %87 = vector.load %arg5[%c0_24, %c1_25, %c0_26, %c0_27] : memref<1x4x8x256xf32, #tpu.memory_space<vmem>>, vector<1x1x8x256xf32>
    %88 = vector.shape_cast %87 : vector<1x1x8x256xf32> to vector<8x256xf32>
    %89 = vector.shape_cast %77 : vector<8x256xf32> to vector<1x1x8x256xf32>
    tpu.vector_store %arg5[%c0_24, %c1_25, %c0_26, %c0_27], %89 {strides = array<i32>} : memref<1x4x8x256xf32, #tpu.memory_space<vmem>>, vector<1x1x8x256xf32>,
    %c1_28 = arith.constant 1 : index
    %c0_29 = arith.constant 0 : index
    %c0_30 = arith.constant 0 : index
    %c0_31 = arith.constant 0 : index
    %90 = vector.load %arg2[%c1_28, %c0_29, %c0_30, %c0_31] : memref<2x1x8x8xi32, #tpu.memory_space<vmem>>, vector<1x1x8x8xi32>
    %91 = vector.shape_cast %90 : vector<1x1x8x8xi32> to vector<8x8xi32>
    %c1_32 = arith.constant 1 : index
    %c0_33 = arith.constant 0 : index
    %c0_34 = arith.constant 0 : index
    %92 = vector.load %arg3[%c1_32, %c0_33, %c0_34] : memref<2x10x64xf32, #tpu.memory_space<vmem>>, vector<1x10x64xf32>
    %93 = vector.shape_cast %92 : vector<1x10x64xf32> to vector<10x64xf32>
    %94 = vector.extract_strided_slice %91 {offsets = [0, 0], sizes = [8, 1], strides = [1, 1]} : vector<8x8xi32> to vector<8x1xi32>
    %95 = tpu.iota {dimensions = array<i32: 1>} : vector<8x10xi32>
    %96 = vector.broadcast %94 : vector<8x1xi32> to vector<8x10xi32>
    %97 = arith.cmpi eq, %96, %95 : vector<8x10xi32>
    %98 = arith.extui %97 : vector<8x10xi1> to vector<8x10xi32>
    %99 = arith.sitofp %98 : vector<8x10xi32> to vector<8x10xf32>
    %cst_35 = arith.constant dense<0.000000e+00> : vector<8x64xf32>
    %100 = tpu.matmul %99, %93, %cst_35 {dimension_numbers = #tpu.dot_dimension_numbers<[1], [0], [0], [1], [0, 0, 1, 1], [], []>} : vector<8x10xf32>, vector<10x64xf32>, vector<8x64xf32> -> vector<8x64xf32>
    %101 = vector.extract_strided_slice %100 {offsets = [0, 0], sizes = [8, 32], strides = [1, 1]} : vector<8x64xf32> to vector<8x32xf32>
    %102 = vector.extract_strided_slice %100 {offsets = [0, 32], sizes = [8, 32], strides = [1, 1]} : vector<8x64xf32> to vector<8x32xf32>
    %103 = vector.extract_strided_slice %91 {offsets = [0, 1], sizes = [8, 1], strides = [1, 1]} : vector<8x8xi32> to vector<8x1xi32>
    %104 = tpu.iota {dimensions = array<i32: 1>} : vector<8x10xi32>
    %105 = vector.broadcast %103 : vector<8x1xi32> to vector<8x10xi32>
    %106 = arith.cmpi eq, %105, %104 : vector<8x10xi32>
    %107 = arith.extui %106 : vector<8x10xi1> to vector<8x10xi32>
    %108 = arith.sitofp %107 : vector<8x10xi32> to vector<8x10xf32>
    %cst_36 = arith.constant dense<0.000000e+00> : vector<8x64xf32>
    %109 = tpu.matmul %108, %93, %cst_36 {dimension_numbers = #tpu.dot_dimension_numbers<[1], [0], [0], [1], [0, 0, 1, 1], [], []>} : vector<8x10xf32>, vector<10x64xf32>, vector<8x64xf32> -> vector<8x64xf32>
    %110 = vector.extract_strided_slice %109 {offsets = [0, 0], sizes = [8, 32], strides = [1, 1]} : vector<8x64xf32> to vector<8x32xf32>
    %111 = vector.extract_strided_slice %109 {offsets = [0, 32], sizes = [8, 32], strides = [1, 1]} : vector<8x64xf32> to vector<8x32xf32>
    %112 = vector.extract_strided_slice %91 {offsets = [0, 2], sizes = [8, 1], strides = [1, 1]} : vector<8x8xi32> to vector<8x1xi32>
    %113 = tpu.iota {dimensions = array<i32: 1>} : vector<8x10xi32>
    %114 = vector.broadcast %112 : vector<8x1xi32> to vector<8x10xi32>
    %115 = arith.cmpi eq, %114, %113 : vector<8x10xi32>
    %116 = arith.extui %115 : vector<8x10xi1> to vector<8x10xi32>
    %117 = arith.sitofp %116 : vector<8x10xi32> to vector<8x10xf32>
    %cst_37 = arith.constant dense<0.000000e+00> : vector<8x64xf32>
    %118 = tpu.matmul %117, %93, %cst_37 {dimension_numbers = #tpu.dot_dimension_numbers<[1], [0], [0], [1], [0, 0, 1, 1], [], []>} : vector<8x10xf32>, vector<10x64xf32>, vector<8x64xf32> -> vector<8x64xf32>
    %119 = vector.extract_strided_slice %118 {offsets = [0, 0], sizes = [8, 32], strides = [1, 1]} : vector<8x64xf32> to vector<8x32xf32>
    %120 = vector.extract_strided_slice %118 {offsets = [0, 32], sizes = [8, 32], strides = [1, 1]} : vector<8x64xf32> to vector<8x32xf32>
    %121 = vector.extract_strided_slice %91 {offsets = [0, 3], sizes = [8, 1], strides = [1, 1]} : vector<8x8xi32> to vector<8x1xi32>
    %122 = tpu.iota {dimensions = array<i32: 1>} : vector<8x10xi32>
    %123 = vector.broadcast %121 : vector<8x1xi32> to vector<8x10xi32>
    %124 = arith.cmpi eq, %123, %122 : vector<8x10xi32>
    %125 = arith.extui %124 : vector<8x10xi1> to vector<8x10xi32>
    %126 = arith.sitofp %125 : vector<8x10xi32> to vector<8x10xf32>
    %cst_38 = arith.constant dense<0.000000e+00> : vector<8x64xf32>
    %127 = tpu.matmul %126, %93, %cst_38 {dimension_numbers = #tpu.dot_dimension_numbers<[1], [0], [0], [1], [0, 0, 1, 1], [], []>} : vector<8x10xf32>, vector<10x64xf32>, vector<8x64xf32> -> vector<8x64xf32>
    %128 = vector.extract_strided_slice %127 {offsets = [0, 0], sizes = [8, 32], strides = [1, 1]} : vector<8x64xf32> to vector<8x32xf32>
    %129 = vector.extract_strided_slice %127 {offsets = [0, 32], sizes = [8, 32], strides = [1, 1]} : vector<8x64xf32> to vector<8x32xf32>
    %130 = vector.extract_strided_slice %91 {offsets = [0, 4], sizes = [8, 1], strides = [1, 1]} : vector<8x8xi32> to vector<8x1xi32>
    %131 = tpu.iota {dimensions = array<i32: 1>} : vector<8x10xi32>
    %132 = vector.broadcast %130 : vector<8x1xi32> to vector<8x10xi32>
    %133 = arith.cmpi eq, %132, %131 : vector<8x10xi32>
    %134 = arith.extui %133 : vector<8x10xi1> to vector<8x10xi32>
    %135 = arith.sitofp %134 : vector<8x10xi32> to vector<8x10xf32>
    %cst_39 = arith.constant dense<0.000000e+00> : vector<8x64xf32>
    %136 = tpu.matmul %135, %93, %cst_39 {dimension_numbers = #tpu.dot_dimension_numbers<[1], [0], [0], [1], [0, 0, 1, 1], [], []>} : vector<8x10xf32>, vector<10x64xf32>, vector<8x64xf32> -> vector<8x64xf32>
    %137 = vector.extract_strided_slice %136 {offsets = [0, 0], sizes = [8, 32], strides = [1, 1]} : vector<8x64xf32> to vector<8x32xf32>
    %138 = vector.extract_strided_slice %136 {offsets = [0, 32], sizes = [8, 32], strides = [1, 1]} : vector<8x64xf32> to vector<8x32xf32>
    %139 = vector.extract_strided_slice %91 {offsets = [0, 5], sizes = [8, 1], strides = [1, 1]} : vector<8x8xi32> to vector<8x1xi32>
    %140 = tpu.iota {dimensions = array<i32: 1>} : vector<8x10xi32>
    %141 = vector.broadcast %139 : vector<8x1xi32> to vector<8x10xi32>
    %142 = arith.cmpi eq, %141, %140 : vector<8x10xi32>
    %143 = arith.extui %142 : vector<8x10xi1> to vector<8x10xi32>
    %144 = arith.sitofp %143 : vector<8x10xi32> to vector<8x10xf32>
    %cst_40 = arith.constant dense<0.000000e+00> : vector<8x64xf32>
    %145 = tpu.matmul %144, %93, %cst_40 {dimension_numbers = #tpu.dot_dimension_numbers<[1], [0], [0], [1], [0, 0, 1, 1], [], []>} : vector<8x10xf32>, vector<10x64xf32>, vector<8x64xf32> -> vector<8x64xf32>
    %146 = vector.extract_strided_slice %145 {offsets = [0, 0], sizes = [8, 32], strides = [1, 1]} : vector<8x64xf32> to vector<8x32xf32>
    %147 = vector.extract_strided_slice %145 {offsets = [0, 32], sizes = [8, 32], strides = [1, 1]} : vector<8x64xf32> to vector<8x32xf32>
    %148 = vector.extract_strided_slice %91 {offsets = [0, 6], sizes = [8, 1], strides = [1, 1]} : vector<8x8xi32> to vector<8x1xi32>
    %149 = tpu.iota {dimensions = array<i32: 1>} : vector<8x10xi32>
    %150 = vector.broadcast %148 : vector<8x1xi32> to vector<8x10xi32>
    %151 = arith.cmpi eq, %150, %149 : vector<8x10xi32>
    %152 = arith.extui %151 : vector<8x10xi1> to vector<8x10xi32>
    %153 = arith.sitofp %152 : vector<8x10xi32> to vector<8x10xf32>
    %cst_41 = arith.constant dense<0.000000e+00> : vector<8x64xf32>
    %154 = tpu.matmul %153, %93, %cst_41 {dimension_numbers = #tpu.dot_dimension_numbers<[1], [0], [0], [1], [0, 0, 1, 1], [], []>} : vector<8x10xf32>, vector<10x64xf32>, vector<8x64xf32> -> vector<8x64xf32>
    %155 = vector.extract_strided_slice %154 {offsets = [0, 0], sizes = [8, 32], strides = [1, 1]} : vector<8x64xf32> to vector<8x32xf32>
    %156 = vector.extract_strided_slice %154 {offsets = [0, 32], sizes = [8, 32], strides = [1, 1]} : vector<8x64xf32> to vector<8x32xf32>
    %157 = vector.extract_strided_slice %91 {offsets = [0, 7], sizes = [8, 1], strides = [1, 1]} : vector<8x8xi32> to vector<8x1xi32>
    %158 = tpu.iota {dimensions = array<i32: 1>} : vector<8x10xi32>
    %159 = vector.broadcast %157 : vector<8x1xi32> to vector<8x10xi32>
    %160 = arith.cmpi eq, %159, %158 : vector<8x10xi32>
    %161 = arith.extui %160 : vector<8x10xi1> to vector<8x10xi32>
    %162 = arith.sitofp %161 : vector<8x10xi32> to vector<8x10xf32>
    %cst_42 = arith.constant dense<0.000000e+00> : vector<8x64xf32>
    %163 = tpu.matmul %162, %93, %cst_42 {dimension_numbers = #tpu.dot_dimension_numbers<[1], [0], [0], [1], [0, 0, 1, 1], [], []>} : vector<8x10xf32>, vector<10x64xf32>, vector<8x64xf32> -> vector<8x64xf32>
    %164 = vector.extract_strided_slice %163 {offsets = [0, 0], sizes = [8, 32], strides = [1, 1]} : vector<8x64xf32> to vector<8x32xf32>
    %165 = vector.extract_strided_slice %163 {offsets = [0, 32], sizes = [8, 32], strides = [1, 1]} : vector<8x64xf32> to vector<8x32xf32>
    %166 = tpu.concatenate %101, %110, %119, %128, %137, %146, %155, %164 in 1 : vector<8x32xf32>, vector<8x32xf32>, vector<8x32xf32>, vector<8x32xf32>, vector<8x32xf32>, vector<8x32xf32>, vector<8x32xf32>, vector<8x32xf32> -> vector<8x256xf32>
    %167 = tpu.concatenate %102, %111, %120, %129, %138, %147, %156, %165 in 1 : vector<8x32xf32>, vector<8x32xf32>, vector<8x32xf32>, vector<8x32xf32>, vector<8x32xf32>, vector<8x32xf32>, vector<8x32xf32>, vector<8x32xf32> -> vector<8x256xf32>
    %c0_43 = arith.constant 0 : index
    %c2 = arith.constant 2 : index
    %c0_44 = arith.constant 0 : index
    %c0_45 = arith.constant 0 : index
    %168 = vector.load %arg4[%c0_43, %c2, %c0_44, %c0_45] : memref<1x4x8x256xf32, #tpu.memory_space<vmem>>, vector<1x1x8x256xf32>
    %169 = vector.shape_cast %168 : vector<1x1x8x256xf32> to vector<8x256xf32>
    %170 = vector.shape_cast %166 : vector<8x256xf32> to vector<1x1x8x256xf32>
    tpu.vector_store %arg4[%c0_43, %c2, %c0_44, %c0_45], %170 {strides = array<i32>} : memref<1x4x8x256xf32, #tpu.memory_space<vmem>>, vector<1x1x8x256xf32>,
    %c0_46 = arith.constant 0 : index
    %c2_47 = arith.constant 2 : index
    %c0_48 = arith.constant 0 : index
    %c0_49 = arith.constant 0 : index
    %171 = vector.load %arg5[%c0_46, %c2_47, %c0_48, %c0_49] : memref<1x4x8x256xf32, #tpu.memory_space<vmem>>, vector<1x1x8x256xf32>
    %172 = vector.shape_cast %171 : vector<1x1x8x256xf32> to vector<8x256xf32>
    %173 = vector.shape_cast %167 : vector<8x256xf32> to vector<1x1x8x256xf32>
    tpu.vector_store %arg5[%c0_46, %c2_47, %c0_48, %c0_49], %173 {strides = array<i32>} : memref<1x4x8x256xf32, #tpu.memory_space<vmem>>, vector<1x1x8x256xf32>,
    %c0_50 = arith.constant 0 : index
    %c3 = arith.constant 3 : index
    %c0_51 = arith.constant 0 : index
    %c0_52 = arith.constant 0 : index
    %174 = vector.load %arg4[%c0_50, %c3, %c0_51, %c0_52] : memref<1x4x8x256xf32, #tpu.memory_space<vmem>>, vector<1x1x8x256xf32>
    %175 = vector.shape_cast %174 : vector<1x1x8x256xf32> to vector<8x256xf32>
    %176 = vector.shape_cast %166 : vector<8x256xf32> to vector<1x1x8x256xf32>
    tpu.vector_store %arg4[%c0_50, %c3, %c0_51, %c0_52], %176 {strides = array<i32>} : memref<1x4x8x256xf32, #tpu.memory_space<vmem>>, vector<1x1x8x256xf32>,
    %c0_53 = arith.constant 0 : index
    %c3_54 = arith.constant 3 : index
    %c0_55 = arith.constant 0 : index
    %c0_56 = arith.constant 0 : index
    %177 = vector.load %arg5[%c0_53, %c3_54, %c0_55, %c0_56] : memref<1x4x8x256xf32, #tpu.memory_space<vmem>>, vector<1x1x8x256xf32>
    %178 = vector.shape_cast %177 : vector<1x1x8x256xf32> to vector<8x256xf32>
    %179 = vector.shape_cast %167 : vector<8x256xf32> to vector<1x1x8x256xf32>
    tpu.vector_store %arg5[%c0_53, %c3_54, %c0_55, %c0_56], %179 {strides = array<i32>} : memref<1x4x8x256xf32, #tpu.memory_space<vmem>>, vector<1x1x8x256xf32>,
    return
  }
  func.func @transform_0(%arg0: i32, %arg1: i32) -> (i32, i32, i32, i32) {
    %c0_i32 = arith.constant 0 : i32
    %c0_i32_0 = arith.constant 0 : i32
    %c0_i32_1 = arith.constant 0 : i32
    return %c0_i32, %arg0, %arg1, %c0_i32_0 : i32, i32, i32, i32
  }
  func.func @transform_1(%arg0: i32, %arg1: i32) -> (i32, i32, i32) {
    %c0_i32 = arith.constant 0 : i32
    %c0_i32_0 = arith.constant 0 : i32
    %c0_i32_1 = arith.constant 0 : i32
    %c0_i32_2 = arith.constant 0 : i32
    return %c0_i32, %c0_i32_0, %c0_i32_1 : i32, i32, i32
  }
  func.func @transform_2(%arg0: i32, %arg1: i32) -> (i32, i32, i32, i32) {
    %c0_i32 = arith.constant 0 : i32
    %c0_i32_0 = arith.constant 0 : i32
    %c0_i32_1 = arith.constant 0 : i32
    return %arg0, %c0_i32, %arg1, %c0_i32_0 : i32, i32, i32, i32
  }
  func.func @transform_3(%arg0: i32, %arg1: i32) -> (i32, i32, i32, i32) {
    %c0_i32 = arith.constant 0 : i32
    %c0_i32_0 = arith.constant 0 : i32
    %c0_i32_1 = arith.constant 0 : i32
    return %arg0, %c0_i32, %arg1, %c0_i32_0 : i32, i32, i32, i32
  }
}

</mosaic_0001>

<bundles_post_ra>
// kernel: tpu_custom_call.1
= control target key start
LH: loop header
LB: loop body
LE: loop exit
PB: predicated region body
PF: predicated region fallthrough
CT: control target
= control target key end

     0   :  { %9 = vsyncpa [#allocation4], 0  ;;  %s2787_s0 = inlined_call_operand.vmem [shape: s32[2,2,8,8], index: 0, kind: input, shape index: {}]   ;;  %s2788_s1 = inlined_call_operand.vmem [shape: f32[2,10,64], index: 1, kind: input, shape index: {}]   ;;  %s2789_s2 = inlined_call_operand.hbm [shape: f32[2,4,8,256], index: 2, kind: output, shape index: {0}]   ;;  %s2790_s3 = inlined_call_operand.hbm [shape: f32[2,4,8,256], index: 3, kind: output, shape index: {1}]  }
   0x1   :  { %11 = vsyncpa [#allocation4 + $0x1], 0 }
   0x2   :  { %12 = vsyncpa [#allocation6], 0 }
   0x3   :  { %14 = vsyncpa [#allocation6 + $0x1], 0  ;;  %s2362_s12 = smov 0   ;;  %s2364_s13 = smov 0  }
   0x4   :  { %s2366_s14 = smov 0   ;;  %s2368_s15 = smov 0  }
   0x5   :  { %s2370_s16 = smov 0   ;;  %s2372_s17 = smov 0  }
   0x6 LB: > { %s1810_s18 = sadd.s32 4294967295, %s2321_s17   ;;  %s1811_s19 = sadd.s32 4294967294, %s2321_s17   ;;  %s2321_s17 = sphi %s2372_s17, %s20_s17   ;;  %s2317_s16 = sphi %s2370_s16, %s2799_s16   ;;  %s2313_s15 = sphi %s2368_s15, %s2798_s15   ;;  %s2309_s14 = sphi %s2366_s14, %s2797_s14   ;;  %s2305_s13 = sphi %s2364_s13, %s2796_s13   ;;  %s2301_s12 = sphi %s2362_s12, %s2795_s12  }
   0x7   : > { %s32_s20 = sadd.s32 1, %s2317_s16  ;;  %s41_s21 = sadd.s32 1, %s2309_s14 }
   0x8   : > { %p34_p0 = scmp.ge.s32.totalorder %s32_s20, 2  ;;  %p48_p1 = scmp.ne.s32.totalorder %s2309_s14, %s2305_s13 }
   0x9   : > { %p49_p2 = scmp.eq.s32.totalorder %s2321_s17, 0  ;;  %p101_p3 = scmp.eq.s32.totalorder %s1810_s18, 1 }
   0xa   : > { %s2801_s20 = smov (%p34_p0, %s32_s20), 0  ;;  %p106_p6 = scmp.ne.s32.totalorder %s2305_s13, %s2301_s12 }
   0xb   : > { %p50_p4 = por %p49_p2, %p48_p1  ;;  %p2401_p5 = por %p101_p3, %p48_p1 }
   0xc   : > { %s36_s23 = ssub.s32 %s2317_s16, %s2801_s20  ;;  %p107_p8 = scmp.eq.s32.totalorder %s1811_s19, 1 }
   0xd   : > { %p39_p7 = scmp.eq.s32.totalorder %s36_s23, 0  ;;  %p1813_p10 = scmp.ge.s32.totalorder %s2321_s17, 2 }
   0xe   : > { %p2412_p9 = por %p107_p8, %p106_p6 }
   0xf   : > { %s2410_s24 = scalar_select %p39_p7, %s2309_s14, %s41_s21  }
  0x10   : > { %154 = sbr.rel (%p1813_p10) target bundleno = 30 (0x1e), region = 20 }
  0x17   : > { %157 = sbr.rel (!%p50_p4) target bundleno = 30 (0x1e), region = 24  ;;  %s159_s26 = sand.u32 (%p50_p4), 1, %s2309_s14  }
  0x18   : > { %s1815_s27 = sshll.u32 (%p50_p4), %s2317_s16, 3  ;;  %s1814_s28 = sshll.u32 (%p50_p4), %s159_s26, 4 }
  0x19   : > { %s164_s4 = scalar_lea.vmem (%p50_p4), %s2787_s0, %s1815_s27  ;;  %s161_s5 = scalar_lea.vmem (%p50_p4), [#allocation2], %s1814_s28 }
  0x1a   : > { %v194_v0 = vld [vmem:[%s164_s4] sm:$0xff] (%p50_p4)  ;;  %v196_v1 = vld [vmem:[%s164_s4 + $0x10] sm:$0xff] (%p50_p4) }
  0x1b   : > { %195 = vst [vmem:[%s161_s5] sm:$0xff] (%p50_p4), %v194_v0  ;;  %197 = vst [vmem:[%s161_s5 + $0x8] sm:$0xff] (%p50_p4), %v196_v1 }
  0x1e PF: > { %p1816_p11 = scmp.ge.s32.totalorder %s2321_s17, 1  ;;  %p202_p12 = scmp.lt.s32.totalorder %s2321_s17, 3 }
  0x20   : > { %p203_p13 = pnand %p1816_p11, %p202_p12 }
  0x21   : > { %s2427_s6 = sand.u32 (!%p203_p13), 1, %s2305_s13   ;;  %v238_v2 = vld [vmem:[%s2788_s1] sm:$0xff] (!%p203_p13)  ;;  %v2323_v3 = vmov (!%p203_p13), 2   ;;  %v2324_v4 = vmov (!%p203_p13), 0   ;;  %v239_v5 = vld [vmem:[%s2788_s1 + $0x8] sm:$0x3] (!%p203_p13)  ;;  %v240_v18 = vlaneseq (!%p203_p13) }
  0x22   : > { %206 = sbr.rel (%p203_p13) target bundleno = 589 (0x24d), region = 62  ;;  %2196 = vset.pattern.permute.xlu1 (!%p203_p13), %v2323_v3  ;;  %2194 = vset.pattern.permute.xlu0 (!%p203_p13), %v2324_v4  ;;  %s1817_s9 = sshll.u32 (!%p203_p13), %s2427_s6, 4  ;;  %vm252_vm0 = vcmask (!%p203_p13), 1041408   ;;  %v2325_v7 = vmov (!%p203_p13), 0.0|0.0   ;;  %v2437_v8 = vpack.c.bf16 (!%p203_p13), %v239_v5, %v238_v2  ;;  %vm2326_vm1 = vmmov (!%p203_p13), 1   ;;  %v1849_v31 = vld [vmem:[%s2788_s1 + $0x10] sm:$0xff] (!%p203_p13) }
  0x23   : > { %s211_s18 = scalar_lea.vmem (!%p203_p13), [#allocation2], %s1817_s9  ;;  %2053 = vmatprep.subr.bf16.mxu0 (!%p203_p13), %v2325_v7  ;;  %2057 = vmatprep.subr.bf16.mxu1 (!%p203_p13), %v2325_v7  ;;  %vm2440_vm2 = vmpackc.low (!%p203_p13), %vm252_vm0, %vm2326_vm1  ;;  %vm2327_vm3 = vmmov (!%p203_p13), 0   ;;  %v2328_v10 = vmov (!%p203_p13), 0.0   ;;  %v2329_v11 = vmov (!%p203_p13), 3   ;;  %v2330_v12 = vmov (!%p203_p13), 1   ;;  %s2335_s27 = smov (!%p203_p13), 32  }
  0x24   : > { %v237_v6 = vld [vmem:[%s211_s18] sm:$0xff] (!%p203_p13)  ;;  %2056 = vmatpush3.bf16.msk.msra.mxu0 (!%p203_p13), %vm2440_vm2, %v2437_v8  ;;  %1945 = vmatprep.mubr.msk.f32.mxu0 (!%p203_p13), %vm2327_vm3, %v2328_v10  ;;  %v2331_v13 = vmov (!%p203_p13), 4   ;;  %v2332_v14 = vmov (!%p203_p13), 5   ;;  %v1848_v15 = vld [vmem:[%s211_s18 + $0x8] sm:$0xff] (!%p203_p13)  ;;  %v2333_v16 = vmov (!%p203_p13), 6   ;;  %v2334_v17 = vmov (!%p203_p13), 7  }
  0x25   : > { %406 = vperm.xlu1 (!%p203_p13), %2196, %v237_v6   ;;  %243 = vperm.xlu0 (!%p203_p13), %2194, %v237_v6   ;;  %v2456_v19 = vand.u32 (!%p203_p13), 127, %v240_v18  ;;  %vm248_vm4 = vcmask (!%p203_p13), 80896   ;;  %v1850_v32 = vld [vmem:[%s2788_s1 + $0x18] sm:$0x3] (!%p203_p13)  ;;  %s2336_s28 = smov (!%p203_p13), 96   ;;  %s2337_s29 = smov (!%p203_p13), 64  }
  0x26   : > { %2061 = vmatprep.subr.bf16.mxu0 (!%p203_p13), %v2325_v7  ;;  %2060 = vmatpush3.bf16.msk.msra.mxu1 (!%p203_p13), %vm2440_vm2, %v2437_v8  ;;  %v2086_v35 = vpack.c.bf16 (!%p203_p13), %v1850_v32, %v1849_v31  ;;  %s1818_s30 = sshll.u32 (!%p203_p13), %s2427_s6, 6  ;;  %s1891_s7 = sshll.u32 (!%p203_p13), %s2313_s15, 10 }
  0x27   : > { %1952 = vmatprep.mubr.msk.f32.mxu1 (!%p203_p13), %vm2327_vm3, %v2328_v10  ;;  %2065 = vmatprep.subr.bf16.mxu1 (!%p203_p13), %v2325_v7  ;;  %s2639_s4 = scalar_lea.vmem (!%p203_p13), [#allocation3], %s1818_s30  ;;  %s2647_s5 = scalar_lea.vmem (!%p203_p13), [#allocation5], %s1818_s30 }
  0x28   : > { %s1677_s8 = sshll.u32 (!%p203_p13), %s2639_s4, 4  ;;  %s2684_s11 = scalar_lea.hbm (!%p203_p13), %s2789_s2, %s1891_s7  ;;  %s2686_s8 = int_to_ptr.vmem [resolvable:$true] %s1677_s8 }
  0x29   : > { %2197 = vset.pattern.permute.xlu1 %v2329_v11  ;;  %2195 = vset.pattern.permute.xlu0 %v2330_v12  ;;  %s1695_s18 = sshll.u32 %s2647_s5, 4  ;;  %s1657_s19 = scalar_lea.sflag [#allocation4], %s2427_s6  ;;  %s2732_s18 = int_to_ptr.vmem [resolvable:$true] %s1695_s18 }
  0x2a   : > { %485 = vperm.xlu1 %2197, %v237_v6   ;;  %327 = vperm.xlu0 %2195, %v237_v6   ;;  %s2211_s21 = scalar_lea.vmem %s2686_s8, 1024  ;;  %s2338_s23 = smov [#allocation3]  }
  0x2b   : > { %p2212_p0 = scmp.ne.s32.totalorder %s2686_s8, %s2211_s21  ;;  %s2215_s26 = sshll.u32 %s2338_s23, 4  ;;  %s2216_s26 = int_to_ptr.vmem [resolvable:$false] %s2215_s26 }
  0x2c   : > { %p2218_p3 = scmp.lt.s32.totalorder %s2686_s8, %s2216_s26 }
  0x2d   : > { %p2213_p1 = pnand %p2212_p0, %p2401_p5 }
  0x2e   : > { %2198 = vset.pattern.permute.xlu1 %v2331_v13  ;;  %2199 = vset.pattern.permute.xlu0 %v2332_v14 }
  0x2f   : > { %564 = vperm.xlu1 %2198, %v237_v6   ;;  %643 = vperm.xlu0 %2199, %v237_v6   ;;  %p2214_p2 = pneg %p2213_p1 }
  0x33   : > { %2200 = vset.pattern.permute.xlu1 %v2333_v16  ;;  %2202 = vset.pattern.permute.xlu0 %v2324_v4 }
  0x34   : > { %722 = vperm.xlu1 %2200, %v237_v6   ;;  %954 = vperm.xlu0 %2202, %v1848_v15  }
  0x38   : > { %2201 = vset.pattern.permute.xlu1 %v2334_v17  ;;  %2205 = vset.pattern.permute.xlu0 %v2329_v11 }
  0x39   : > { %801 = vperm.xlu1 %2201, %v237_v6   ;;  %1194 = vperm.xlu0 %2205, %v1848_v15  }
  0x3d   : > { %2203 = vset.pattern.permute.xlu1 %v2330_v12  ;;  %2208 = vset.pattern.permute.xlu0 %v2333_v16 }
  0x3e   : > { %1036 = vperm.xlu1 %2203, %v1848_v15   ;;  %1431 = vperm.xlu0 %2208, %v1848_v15  }
  0x42   : > { %2204 = vset.pattern.permute.xlu1 %v2323_v3  ;;  %2210 = vset.pattern.permute.xlu0 %v2334_v17 }
  0x43   : > { %1115 = vperm.xlu1 %2204, %v1848_v15  }
  0x47   : > { %2206 = vset.pattern.permute.xlu1 %v2331_v13 }
  0x48   : > { %1273 = vperm.xlu1 %2206, %v1848_v15  }
  0x4c   : > { %2207 = vset.pattern.permute.xlu1 %v2332_v14 }
  0x4d   : > { %1352 = vperm.xlu1 %2207, %v1848_v15  }
  0x51   : > { %2209 = vset.pattern.permute.xlu1 %v2334_v17 }
  0x52   : > { %1510 = vperm.xlu1 %2209, %v1848_v15  }
  0xa4   : > { %v407_v20 = vpop.permute.xlu1 %406  ;;  %v244_v21 = vpop.permute.xlu0 %243 }
  0xa5   : > { %vm245_vm5 = vcmp.eq.s32.totalorder %v244_v21, %v2456_v19  ;;  %vm408_vm6 = vcmp.eq.s32.totalorder %v407_v20, %v2456_v19 }
  0xa6   : > { %v1820_v22 = vsel %vm245_vm5, 1.0, %v2328_v10  ;;  %v1826_v25 = vsel %vm408_vm6, 1.0, %v2328_v10 }
  0xa7   : > { %1946 = vmatmul.mubr.msk.f32.vlgmr.msra.gmra.mrb[0].mxu0 %vm248_vm4, %v1820_v22 }
  0xa8   : > { %2064 = vmatpush3.bf16.msk.msra.mxu0 %vm2440_vm2, %v2437_v8  ;;  %1959 = vmatprep.mubr.msk.f32.mxu0 %vm2327_vm3, %v2328_v10 }
  0xa9   : > { %v486_v23 = vpop.permute.xlu1 %485  ;;  %v328_v24 = vpop.permute.xlu0 %327  ;;  %2069 = vmatprep.subr.bf16.mxu0 %v2325_v7 }
  0xaa   : > { %vm329_vm7 = vcmp.eq.s32.totalorder %v328_v24, %v2456_v19  ;;  %vm487_vm8 = vcmp.eq.s32.totalorder %v486_v23, %v2456_v19 }
  0xab   : > { %v1823_v26 = vsel %vm329_vm7, 1.0, %v2328_v10  ;;  %1960 = vmatmul.mubr.msk.f32.vlgmr.msra.gmra.mrb[2].mxu0 %vm248_vm4, %v1826_v25  ;;  %v1829_v29 = vsel %vm487_vm8, 1.0, %v2328_v10 }
  0xac   : > { %1953 = vmatmul.mubr.msk.f32.vlgmr.msra.gmra.mrb[0].mxu1 %vm248_vm4, %v1823_v26  ;;  %2072 = vmatpush3.bf16.msk.msra.mxu0 %vm2440_vm2, %v2437_v8 }
  0xad   : > { %2068 = vmatpush3.bf16.msk.msra.mxu1 %vm2440_vm2, %v2437_v8  ;;  %1966 = vmatprep.mubr.msk.f32.mxu1 %vm2327_vm3, %v2328_v10 }
  0xae   : > { %v565_v27 = vpop.permute.xlu1 %564  ;;  %1973 = vmatprep.mubr.msk.f32.mxu0 %vm2327_vm3, %v2328_v10  ;;  %2073 = vmatprep.subr.bf16.mxu1 %v2325_v7  ;;  %v644_v28 = vpop.permute.xlu0 %643 }
  0xaf   : > { %vm566_vm9 = vcmp.eq.s32.totalorder %v565_v27, %v2456_v19  ;;  %vm645_vm10 = vcmp.eq.s32.totalorder %v644_v28, %v2456_v19  ;;  %2077 = vmatprep.subr.bf16.mxu0 %v2325_v7 }
  0xb0   : > { %v1832_v30 = vsel %vm566_vm9, 1.0, %v2328_v10  ;;  %1967 = vmatmul.mubr.msk.f32.vlgmr.msra.gmra.mrb[2].mxu1 %vm248_vm4, %v1829_v29  ;;  %v1835_v33 = vsel %vm645_vm10, 1.0, %v2328_v10 }
  0xb1   : > { %1974 = vmatmul.mubr.msk.f32.vlgmr.msra.gmra.mrb[4].mxu0 %vm248_vm4, %v1832_v30  ;;  %2076 = vmatpush3.bf16.msk.msra.mxu1 %vm2440_vm2, %v2437_v8 }
  0xb2   : > { %1980 = vmatprep.mubr.msk.f32.mxu1 %vm2327_vm3, %v2328_v10  ;;  %2080 = vmatpush3.bf16.msk.msra.mxu0 %vm2440_vm2, %v2437_v8 }
  0xb3   : > { %v723_v34 = vpop.permute.xlu1 %722  ;;  %1987 = vmatprep.mubr.msk.f32.mxu0 %vm2327_vm3, %v2328_v10  ;;  %2081 = vmatprep.subr.bf16.mxu1 %v2325_v7  ;;  %v955_v36 = vpop.permute.xlu0 %954 }
  0xb4   : > { %vm724_vm11 = vcmp.eq.s32.totalorder %v723_v34, %v2456_v19  ;;  %1981 = vmatmul.mubr.msk.f32.vlgmr.msra.gmra.mrb[4].mxu1 %vm248_vm4, %v1835_v33  ;;  %2085 = vmatprep.subr.bf16.mxu0 %v2325_v7  ;;  %vm956_vm12 = vcmp.eq.s32.totalorder %v955_v36, %v2456_v19 }
  0xb5   : > { %v1838_v37 = vsel %vm724_vm11, 1.0, %v2328_v10  ;;  %2084 = vmatpush3.bf16.msk.msra.mxu1 %vm2440_vm2, %v2437_v8  ;;  %1994 = vmatprep.mubr.msk.f32.mxu1 %vm2327_vm3, %v2328_v10  ;;  %v1851_v38 = vsel %vm956_vm12, 1.0, %v2328_v10 }
  0xb6   : > { %1988 = vmatmul.mubr.msk.f32.vlgmr.msra.gmra.mrb[6].mxu0 %vm248_vm4, %v1838_v37  ;;  %2089 = vmatprep.subr.bf16.mxu1 %v2325_v7 }
  0xb7   : > { %2088 = vmatpush3.bf16.msk.msra.mxu0 %vm2440_vm2, %v2086_v35  ;;  %2001 = vmatprep.mubr.msk.f32.mxu0 %vm2327_vm3, %v2328_v10 }
  0xb8   : > { %v802_v39 = vpop.permute.xlu1 %801  ;;  %2093 = vmatprep.subr.bf16.mxu0 %v2325_v7  ;;  %v1195_v41 = vpop.permute.xlu0 %1194 }
  0xb9   : > { %vm803_vm13 = vcmp.eq.s32.totalorder %v802_v39, %v2456_v19  ;;  %vm1196_vm15 = vcmp.eq.s32.totalorder %v1195_v41, %v2456_v19 }
  0xba   : > { %v1841_v40 = vsel %vm803_vm13, 1.0, %v2328_v10  ;;  %2002 = vmatmul.mubr.msk.f32.vlgmr.msra.gmra.mrb[8].mxu0 %vm248_vm4, %v1851_v38  ;;  %v1860_v44 = vsel %vm1196_vm15, 1.0, %v2328_v10 }
  0xbb   : > { %1995 = vmatmul.mubr.msk.f32.vlgmr.msra.gmra.mrb[6].mxu1 %vm248_vm4, %v1841_v40  ;;  %2096 = vmatpush3.bf16.msk.msra.mxu0 %vm2440_vm2, %v2086_v35 }
  0xbc   : > { %2092 = vmatpush3.bf16.msk.msra.mxu1 %vm2440_vm2, %v2086_v35  ;;  %2008 = vmatprep.mubr.msk.f32.mxu1 %vm2327_vm3, %v2328_v10 }
  0xbd   : > { %v1037_v42 = vpop.permute.xlu1 %1036  ;;  %2015 = vmatprep.mubr.msk.f32.mxu0 %vm2327_vm3, %v2328_v10  ;;  %2097 = vmatprep.subr.bf16.mxu1 %v2325_v7  ;;  %v1432_v47 = vpop.permute.xlu0 %1431 }
  0xbe   : > { %vm1038_vm14 = vcmp.eq.s32.totalorder %v1037_v42, %v2456_v19  ;;  %2101 = vmatprep.subr.bf16.mxu0 %v2325_v7  ;;  %vm1433_vm5 = vcmp.eq.s32.totalorder %v1432_v47, %v2456_v19 }
  0xbf   : > { %v1854_v43 = vsel %vm1038_vm14, 1.0, %v2328_v10  ;;  %v1869_v50 = vsel %vm1433_vm5, 1.0, %v2328_v10 }
  0xc0   : > { %2009 = vmatmul.mubr.msk.f32.vlgmr.msra.gmra.mrb[8].mxu1 %vm248_vm4, %v1854_v43 }
  0xc1   : > { %2100 = vmatpush3.bf16.msk.msra.mxu1 %vm2440_vm2, %v2086_v35  ;;  %2022 = vmatprep.mubr.msk.f32.mxu1 %vm2327_vm3, %v2328_v10 }
  0xc2   : > { %v1116_v45 = vpop.permute.xlu1 %1115  ;;  %2105 = vmatprep.subr.bf16.mxu1 %v2325_v7 }
  0xc3   : > { %vm1117_vm0 = vcmp.eq.s32.totalorder %v1116_v45, %v2456_v19 }
  0xc4   : > { %v1857_v46 = vsel %vm1117_vm0, 1.0, %v2328_v10  ;;  %2023 = vmatmul.mubr.msk.f32.vlgmr.msra.gmra.mrb[10].mxu1 %vm248_vm4, %v1860_v44 }
  0xc5   : > { %2016 = vmatmul.mubr.msk.f32.vlgmr.msra.gmra.mrb[10].mxu0 %vm248_vm4, %v1857_v46  ;;  %2108 = vmatpush3.bf16.msk.msra.mxu1 %vm2440_vm2, %v2086_v35 }
  0xc6   : > { %2104 = vmatpush3.bf16.msk.msra.mxu0 %vm2440_vm2, %v2086_v35  ;;  %2029 = vmatprep.mubr.msk.f32.mxu0 %vm2327_vm3, %v2328_v10 }
  0xc7   : > { %v1274_v48 = vpop.permute.xlu1 %1273  ;;  %2036 = vmatprep.mubr.msk.f32.mxu1 %vm2327_vm3, %v2328_v10  ;;  %2109 = vmatprep.subr.bf16.mxu0 %v2325_v7 }
  0xc8   : > { %vm1275_vm1 = vcmp.eq.s32.totalorder %v1274_v48, %v2456_v19  ;;  %2113 = vmatprep.subr.bf16.mxu1 %v2325_v7 }
  0xc9   : > { %v1863_v49 = vsel %vm1275_vm1, 1.0, %v2328_v10 }
  0xca   : > { %2030 = vmatmul.mubr.msk.f32.vlgmr.msra.gmra.mrb[12].mxu0 %vm248_vm4, %v1863_v49 }
  0xcb   : > { %2112 = vmatpush3.bf16.msk.msra.mxu0 %vm2440_vm2, %v2086_v35  ;;  %2043 = vmatprep.mubr.msk.f32.mxu0 %vm2327_vm3, %v2328_v10 }
  0xcc   : > { %v1353_v51 = vpop.permute.xlu1 %1352 }
  0xcd   : > { %vm1354_vm6 = vcmp.eq.s32.totalorder %v1353_v51, %v2456_v19 }
  0xce   : > { %v1866_v52 = vsel %vm1354_vm6, 1.0, %v2328_v10  ;;  %2044 = vmatmul.mubr.msk.f32.vlgmr.msra.gmra.mrb[14].mxu0 %vm248_vm4, %v1869_v50 }
  0xcf   : > { %2037 = vmatmul.mubr.msk.f32.vlgmr.msra.gmra.mrb[12].mxu1 %vm248_vm4, %v1866_v52 }
  0xd0   : > { %2116 = vmatpush3.bf16.msk.msra.mxu1 %vm2440_vm2, %v2086_v35  ;;  %2050 = vmatprep.mubr.msk.f32.mxu1 %vm2327_vm3, %v2328_v10  ;;  %vm903_vm2 = vcmask 261120   ;;  %vm905_vm3 = vcmask 523264  }
  0xd1   : > { %v1511_v53 = vpop.permute.xlu1 %1510 }
  0xd2   : > { %vm1512_vm7 = vcmp.eq.s32.totalorder %v1511_v53, %v2456_v19 }
  0xd3   : > { %v1872_v54 = vsel %vm1512_vm7, 1.0, %v2328_v10 }
  0xd4   : > { %2051 = vmatmul.mubr.msk.f32.vlgmr.msra.gmra.mrb[14].mxu1 %vm248_vm4, %v1872_v54  ;;  %vm907_vm4 = vcmask 785408  }
 0x17a   : > { %v2586_v55 = vpop.f32.mrb[0].mxu0 }
 0x17b   : > { %v1947_v56 = vpop.f32.mrb[1].mxu0 }
 0x17e   : > { %v480_v57 = vpop.f32.mrb[2].mxu0 }
 0x17f   : > { %v2588_v58 = vpop.f32.mrb[0].mxu1  ;;  %v1961_v59 = vpop.f32.mrb[3].mxu0 }
 0x180   : > { %880 = vrot.lane.b32.xlu1 %v2588_v58, %s2335_s27  ;;  %v1954_v60 = vpop.f32.mrb[1].mxu1 }
 0x183   : > { %v559_v61 = vpop.f32.mrb[2].mxu1 }
 0x184   : > { %v2592_v62 = vpop.f32.mrb[4].mxu0  ;;  %913 = vrot.lane.b32.xlu1 %v2586_v55, %s2336_s28  ;;  %v1968_v63 = vpop.f32.mrb[3].mxu1 }
 0x185   : > { %v1975_v0 = vpop.f32.mrb[5].mxu0 }
 0x187   : > { %v2596_v1 = vpop.f32.mrb[4].mxu1 }
 0x188   : > { %884 = vrot.lane.b32.xlu1 %v480_v57, %s2337_s29  ;;  %892 = vrot.lane.b32.xlu0 %v2596_v1, %s2335_s27  ;;  %v1982_v2 = vpop.f32.mrb[5].mxu1 }
 0x189   : > { %v796_v3 = vpop.f32.mrb[6].mxu0 }
 0x18a   : > { %v1989_v4 = vpop.f32.mrb[7].mxu0 }
 0x18c   : > { %916 = vrot.lane.b32.xlu1 %v480_v57, %s2335_s27  ;;  %923 = vrot.lane.b32.xlu0 %v2592_v62, %s2336_s28 }
 0x18d   : > { %v2604_v5 = vpop.f32.mrb[8].mxu0 }
 0x18e   : > { %v875_v6 = vpop.f32.mrb[6].mxu1  ;;  %v2003_v7 = vpop.f32.mrb[9].mxu0 }
 0x18f   : > { %v1996_v8 = vpop.f32.mrb[7].mxu1 }
 0x190   : > { %888 = vrot.lane.b32.xlu1 %v559_v61, %s2336_s28  ;;  %896 = vrot.lane.b32.xlu0 %v796_v3, %s2337_s29 }
 0x193   : > { %v2608_v9 = vpop.f32.mrb[8].mxu1 }
 0x194   : > { %919 = vrot.lane.b32.xlu1 %v559_v61, %s2337_s29  ;;  %926 = vrot.lane.b32.xlu0 %v796_v3, %s2335_s27  ;;  %v2010_v10 = vpop.f32.mrb[9].mxu1 }
 0x197   : > { %v1268_v11 = vpop.f32.mrb[10].mxu1 }
 0x198   : > { %900 = vrot.lane.b32.xlu0 %v875_v6, %s2336_s28  ;;  %1589 = vrot.lane.b32.xlu1 %v2608_v9, %s2335_s27  ;;  %v1189_v12 = vpop.f32.mrb[10].mxu0  ;;  %v2024_v13 = vpop.f32.mrb[11].mxu1 }
 0x199   : > { %v2017_v14 = vpop.f32.mrb[11].mxu0 }
 0x19c   : > { %929 = vrot.lane.b32.xlu0 %v875_v6, %s2337_s29  ;;  %1619 = vrot.lane.b32.xlu1 %v2604_v5, %s2336_s28 }
 0x19d   : > { %v2618_v15 = vpop.f32.mrb[12].mxu0 }
 0x19e   : > { %v2031_v16 = vpop.f32.mrb[13].mxu0 }
 0x1a0   : > { %1593 = vrot.lane.b32.xlu1 %v1189_v12, %s2337_s29 }
 0x1a1   : > { %v1505_v17 = vpop.f32.mrb[14].mxu0 }
 0x1a2   : > { %v2621_v18 = vpop.f32.mrb[12].mxu1  ;;  %v2045_v19 = vpop.f32.mrb[15].mxu0 }
 0x1a3   : > { %1601 = vrot.lane.b32.xlu0 %v2621_v18, %s2335_s27  ;;  %v2038_v20 = vpop.f32.mrb[13].mxu1 }
 0x1a4   : > { %1622 = vrot.lane.b32.xlu1 %v1189_v12, %s2335_s27 }
 0x1a7   : > { %1629 = vrot.lane.b32.xlu0 %v2618_v15, %s2336_s28  ;;  %v1584_v21 = vpop.f32.mrb[14].mxu1 }
 0x1a8   : > { %1597 = vrot.lane.b32.xlu1 %v1268_v11, %s2336_s28  ;;  %v2052_v22 = vpop.f32.mrb[15].mxu1 }
 0x1ab   : > { %1605 = vrot.lane.b32.xlu0 %v1505_v17, %s2337_s29 }
 0x1ac   : > { %1625 = vrot.lane.b32.xlu1 %v1268_v11, %s2337_s29 }
 0x1af   : > { %1632 = vrot.lane.b32.xlu0 %v1505_v17, %s2335_s27  ;;  %s2217_s27 = scalar_lea.vmem %s2216_s26, 2048 }
 0x1b0   : > { %p2219_p4 = scmp.lt.s32.totalorder %s2217_s27, %s2211_s21 }
 0x1b2   : > { %p2220_p6 = por %p2219_p4, %p2218_p3 }
 0x1b3   : > { %1609 = vrot.lane.b32.xlu0 %v1584_v21, %s2336_s28 }
 0x1b4   : > { %p2221_p7 = pnand %p2220_p6, %p2214_p2 }
 0x1b7   : > { %1635 = vrot.lane.b32.xlu0 %v1584_v21, %s2337_s29 }
 0x1f2   : > { %v881_v23 = vpop.permute.xlu1 %880 }
 0x1f3   : > { %v904_v29 = vsel %vm903_vm2, %v2586_v55, %v881_v23 }
 0x1f6   : > { %v914_v24 = vpop.permute.xlu1 %913 }
 0x1f7   : > { %v932_v34 = vsel %vm903_vm2, %v914_v24, %v2588_v58 }
 0x1fa   : > { %v885_v25 = vpop.permute.xlu1 %884  ;;  %v893_v26 = vpop.permute.xlu0 %892 }
 0x1fb   : > { %v906_v30 = vsel %vm905_vm3, %v904_v29, %v885_v25  ;;  %v909_v39 = vsel %vm903_vm2, %v2592_v62, %v893_v26 }
 0x1fe   : > { %v917_v27 = vpop.permute.xlu1 %916  ;;  %v924_v28 = vpop.permute.xlu0 %923 }
 0x1ff   : > { %v933_v35 = vsel %vm905_vm3, %v932_v34, %v917_v27  ;;  %v935_v44 = vsel %vm903_vm2, %v924_v28, %v2596_v1 }
 0x202   : > { %v889_v31 = vpop.permute.xlu1 %888  ;;  %v897_v32 = vpop.permute.xlu0 %896 }
 0x203   : > { %v908_v33 = vsel %vm907_vm4, %v906_v30, %v889_v31  ;;  %v910_v40 = vsel %vm905_vm3, %v909_v39, %v897_v32 }
 0x204   : > { %938 = vst [vmem:[%s2639_s4] sm:$0xff] %v908_v33  ;;  %1844 = vst [vmem:[%s2639_s4 + $0x10] sm:$0xff] %v908_v33 }
 0x206   : > { %v920_v36 = vpop.permute.xlu1 %919  ;;  %v927_v37 = vpop.permute.xlu0 %926 }
 0x207   : > { %v934_v38 = vsel %vm907_vm4, %v933_v35, %v920_v36  ;;  %v936_v45 = vsel %vm905_vm3, %v935_v44, %v927_v37 }
 0x208   : > { %940 = vst [vmem:[%s2647_s5] sm:$0xff] %v934_v38  ;;  %1846 = vst [vmem:[%s2647_s5 + $0x10] sm:$0xff] %v934_v38 }
 0x20a   : > { %v1590_v41 = vpop.permute.xlu1 %1589  ;;  %v901_v42 = vpop.permute.xlu0 %900 }
 0x20b   : > { %v911_v43 = vsel %vm907_vm4, %v910_v40, %v901_v42  ;;  %v1612_v52 = vsel %vm903_vm2, %v2604_v5, %v1590_v41 }
 0x20c   : > { %939 = vst [vmem:[%s2639_s4 + $0x8] sm:$0xff] %v911_v43  ;;  %1845 = vst [vmem:[%s2639_s4 + $0x18] sm:$0xff] %v911_v43 }
 0x20e   : > { %v1620_v46 = vpop.permute.xlu1 %1619  ;;  %v930_v47 = vpop.permute.xlu0 %929 }
 0x20f   : > { %v937_v48 = vsel %vm907_vm4, %v936_v45, %v930_v47  ;;  %v1638_v57 = vsel %vm903_vm2, %v1620_v46, %v2608_v9 }
 0x210   : > { %941 = vst [vmem:[%s2647_s5 + $0x8] sm:$0xff] %v937_v48  ;;  %1847 = vst [vmem:[%s2647_s5 + $0x18] sm:$0xff] %v937_v48 }
 0x212   : > { %v1594_v49 = vpop.permute.xlu1 %1593 }
 0x213   : > { %v1613_v54 = vsel %vm905_vm3, %v1612_v52, %v1594_v49 }
 0x215   : > { %v1602_v50 = vpop.permute.xlu0 %1601 }
 0x216   : > { %v1623_v51 = vpop.permute.xlu1 %1622  ;;  %v1615_v63 = vsel %vm903_vm2, %v2618_v15, %v1602_v50 }
 0x217   : > { %v1639_v59 = vsel %vm905_vm3, %v1638_v57, %v1623_v51 }
 0x219   : > { %v1630_v53 = vpop.permute.xlu0 %1629 }
 0x21a   : > { %v1598_v55 = vpop.permute.xlu1 %1597  ;;  %v1641_v3 = vsel %vm903_vm2, %v1630_v53, %v2621_v18 }
 0x21b   : > { %v1614_v56 = vsel %vm907_vm4, %v1613_v54, %v1598_v55 }
 0x21c   : > { %1875 = vst [vmem:[%s2639_s4 + $0x20] sm:$0xff] %v1614_v56  ;;  %1879 = vst [vmem:[%s2639_s4 + $0x30] sm:$0xff] %v1614_v56 }
 0x21d   : > { %v1606_v58 = vpop.permute.xlu0 %1605 }
 0x21e   : > { %v1626_v60 = vpop.permute.xlu1 %1625  ;;  %v1616_v0 = vsel %vm905_vm3, %v1615_v63, %v1606_v58 }
 0x21f   : > { %v1640_v61 = vsel %vm907_vm4, %v1639_v59, %v1626_v60 }
 0x220   : > { %1877 = vst [vmem:[%s2647_s5 + $0x20] sm:$0xff] %v1640_v61  ;;  %1881 = vst [vmem:[%s2647_s5 + $0x30] sm:$0xff] %v1640_v61 }
 0x221   : > { %v1633_v62 = vpop.permute.xlu0 %1632 }
 0x225   : > { %v1610_v1 = vpop.permute.xlu0 %1609 }
 0x226   : > { %v1617_v2 = vsel %vm907_vm4, %v1616_v0, %v1610_v1 }
 0x227   : > { %1876 = vst [vmem:[%s2639_s4 + $0x28] sm:$0xff] %v1617_v2  ;;  %1880 = vst [vmem:[%s2639_s4 + $0x38] sm:$0xff] %v1617_v2 }
 0x228   : > { %2224 = shalt.err (!%p2221_p7)
}
 0x229   : > { %s2225_s28 = scalar_lea.hbm %s2684_s11, 1024  ;;  %s2229_s4 = scalar_lea.hbm %s2789_s2, 2048 }
 0x22a   : > { %p2226_p8 = scmp.ne.s32.totalorder %s2684_s11, %s2225_s28  ;;  %p2230_p13 = scmp.lt.u32.totalorder %s2684_s11, %s2789_s2 }
 0x22b   : > { %p2231_p0 = scmp.lt.u32.totalorder %s2229_s4, %s2225_s28  ;;  %p2233_p2 = scmp.lt.u32.totalorder %s2225_s28, %s2684_s11 }
 0x22c   : > { %p2227_p11 = pnand %p2226_p8, %p2401_p5 }
 0x22d   : > { %p2232_p1 = por %p2231_p0, %p2230_p13 }
 0x22e   : > { %p2228_p12 = pneg %p2227_p11 }
 0x22f   : > { %p2234_p3 = por %p2233_p2, %p2232_p1 }
 0x231   : > { %p2235_p4 = pnand %p2234_p3, %p2228_p12 }
 0x233   : > { %2238 = shalt.err (!%p2235_p4)
}
 0x234   : > { %s2339_s21 = smov 256   ;;  %s2340_s23 = smov 16   ;;  %v1642_v4 = vsel %vm905_vm3, %v1641_v3, %v1633_v62  ;;  %v1636_v5 = vpop.permute.xlu0 %1635 }
 0x235   : > { %2117 = dma.vmem_to_hbm [thread:$0]  (%p2401_p5), %s2686_s8, 1024, %s2684_s11, %s1657_s19, %s2339_s21, %s2339_s21, %s2340_s23   ;;  %v1643_v6 = vsel %vm907_vm4, %v1642_v4, %v1636_v5 }
 0x236   : > { %s2728_s28 = scalar_lea.hbm %s2790_s3, %s1891_s7  ;;  %1878 = vst [vmem:[%s2647_s5 + $0x28] sm:$0xff] %v1643_v6  ;;  %1882 = vst [vmem:[%s2647_s5 + $0x38] sm:$0xff] %v1643_v6  ;;  %s1662_s8 = scalar_lea.sflag [#allocation6], %s2427_s6 }
 0x237   : > { %s2239_s11 = scalar_lea.vmem %s2732_s18, 1024  ;;  %s2341_s15 = smov [#allocation5]  }
 0x238   : > { %p2240_p6 = scmp.ne.s32.totalorder %s2732_s18, %s2239_s11  ;;  %s2243_s19 = sshll.u32 %s2341_s15, 4  ;;  %s2244_s19 = int_to_ptr.vmem [resolvable:$false] %s2243_s19 }
 0x239   : > { %s2245_s7 = scalar_lea.vmem %s2244_s19, 2048  ;;  %p2246_p11 = scmp.lt.s32.totalorder %s2732_s18, %s2244_s19 }
 0x23a   : > { %p2241_p7 = pnand %p2240_p6, %p2401_p5  ;;  %p2247_p12 = scmp.lt.s32.totalorder %s2245_s7, %s2239_s11 }
 0x23c   : > { %p2242_p8 = pneg %p2241_p7  ;;  %p2248_p13 = por %p2247_p12, %p2246_p11 }
 0x23e   : > { %p2249_p0 = pnand %p2248_p13, %p2242_p8 }
 0x240   : > { %2252 = shalt.err (!%p2249_p0)
}
 0x241   : > { %s2253_s5 = scalar_lea.hbm %s2728_s28, 1024  ;;  %s2257_s4 = scalar_lea.hbm %s2790_s3, 2048 }
 0x242   : > { %p2254_p1 = scmp.ne.s32.totalorder %s2728_s28, %s2253_s5  ;;  %p2258_p4 = scmp.lt.u32.totalorder %s2728_s28, %s2790_s3 }
 0x243   : > { %p2259_p6 = scmp.lt.u32.totalorder %s2257_s4, %s2253_s5  ;;  %p2261_p8 = scmp.lt.u32.totalorder %s2253_s5, %s2728_s28 }
 0x244   : > { %p2255_p2 = pnand %p2254_p1, %p2401_p5 }
 0x245   : > { %p2260_p7 = por %p2259_p6, %p2258_p4 }
 0x246   : > { %p2256_p3 = pneg %p2255_p2 }
 0x247   : > { %p2262_p11 = por %p2261_p8, %p2260_p7 }
 0x249   : > { %p2263_p12 = pnand %p2262_p11, %p2256_p3 }
 0x24b   : > { %2266 = shalt.err (!%p2263_p12)
}
 0x24c   : > { %2118 = dma.vmem_to_hbm [thread:$0]  (%p2401_p5), %s2732_s18, 1024, %s2728_s28, %s1662_s8, %s2339_s21, %s2339_s21, %s2340_s23  }
 0x24d PF: > { %s1710_s26 = sand.u32 1, %s2301_s12   ;;  %p2122_p13 = pnand %p1813_p10, %p2412_p9 }
 0x24e   : > { %s1711_s27 = scalar_lea.sflag [#allocation4], %s1710_s26 }
 0x24f   : > { %2292 = dma.done.wait (!%p2122_p13), %s1711_s27, 1024  }
 0x250   : > { %2294 = vsyncadd (!%p2122_p13), %s1711_s27, 4294966272  ;;  %s1720_s22 = scalar_lea.sflag [#allocation6], %s1710_s26 }
 0x251   : > { %2296 = dma.done.wait (!%p2122_p13), %s1720_s22, 1024  }
 0x252   : > { %2298 = vsyncadd (!%p2122_p13), %s1720_s22, 4294966272  ;;  %s20_s17 = sadd.s32 1, %s2321_s17   ;;  %s2795_s12 = smov %s2305_s13 }
 0x253   : > { %p17_p0 = scmp.ge.s32.totalorder %s20_s17, 4   ;;  %s2796_s13 = smov %s2309_s14 }
 0x254   : > { %s2797_s14 = smov %s2410_s24  ;;  %s2798_s15 = smov %s2317_s16 }
 0x255   : > { %s2799_s16 = smov %s2801_s20  ;;  %19 = sbr.rel (!%p17_p0) target bundleno = 6 (0x6), region = 131 }
 0x25c   :  { %1725 = vsyncpa [#allocation4], 1 }
 0x25d   :  { %1727 = vsyncpa [#allocation4 + $0x1], 1 }
 0x25e   :  { %1728 = vsyncpa [#allocation6], 1 }
 0x25f   :  { %1730 = vsyncpa [#allocation6 + $0x1], 1 }

</bundles_post_ra>
